<compile_context>
chip_gen: v5e
topology: v5e:2x2
jax: 0.10.0
libtpu: 0.0.40
codegen_flags: <defaults>
</compile_context>

<pallas_src>
import functools

import jax
import jax.numpy as jnp
from jax.experimental import pallas as pl
from jax.experimental.pallas import tpu as pltpu

_SUBLANES = 8
_LANES = 128


def _relobralo_kernel(step_ref, rho_ref, slab_ref, out_ref,
                      *, alpha, tau, eps, num_losses):
    step = step_ref[0]            # int32 scalar (SMEM)
    rho = rho_ref[0]              # f32 scalar 0.0 / 1.0 (SMEM)

    slab = slab_ref[...]          # (8, 128) f32, single load
    losses = slab[0:1, :]         # (1, 128)
    init_l = slab[1:2, :]
    prev_l = slab[2:3, :]
    ema = slab[3:4, :]

    lane = jax.lax.broadcasted_iota(jnp.int32, (1, _LANES), 1)
    mask = lane < num_losses                       # valid-loss lanes
    n_f = jnp.float32(num_losses)
    pad_rows = jnp.zeros((_SUBLANES - 4, _LANES), jnp.float32)

    @pl.when(step == 0)
    def _():
        # loss = sum(losses); init_losses = prev_losses = losses; ema unchanged
        total = jnp.sum(jnp.where(mask, losses, 0.0), axis=-1, keepdims=True)
        loss_row = jnp.broadcast_to(total, (1, _LANES))
        out_ref[...] = jnp.concatenate(
            [loss_row, losses, losses, ema, pad_rows], axis=0)

    @pl.when(step != 0)
    def _():
        # Hoist the divisions: z reused for both the max-normalizer and the
        # exp argument (eps-protected denominator used for both; avoids the
        # inf/NaN hazard when an initial loss is exactly zero).
        z_prev = losses / (tau * prev_l + eps)
        z_init = losses / (tau * init_l + eps)

        neg_inf = jnp.float32(-jnp.inf)
        norm_prev = jnp.max(jnp.where(mask, z_prev, neg_inf),
                            axis=-1, keepdims=True)
        norm_init = jnp.max(jnp.where(mask, z_init, neg_inf),
                            axis=-1, keepdims=True)

        lmbda_prev = jnp.where(mask, jnp.exp(z_prev - norm_prev), 0.0)
        lmbda_init = jnp.where(mask, jnp.exp(z_init - norm_init), 0.0)
        lmbda_prev = lmbda_prev * (
            n_f / (jnp.sum(lmbda_prev, axis=-1, keepdims=True) + eps))
        lmbda_init = lmbda_init * (
            n_f / (jnp.sum(lmbda_init, axis=-1, keepdims=True) + eps))

        new_ema = (alpha * (rho * ema + (1.0 - rho) * lmbda_init)
                   + (1.0 - alpha) * lmbda_prev)
        total = jnp.sum(jnp.where(mask, new_ema * losses, 0.0),
                        axis=-1, keepdims=True)
        loss_row = jnp.broadcast_to(total, (1, _LANES))
        # init unchanged, prev <- current losses, ema <- new_ema
        out_ref[...] = jnp.concatenate(
            [loss_row, init_l, losses, new_ema, pad_rows], axis=0)


@functools.partial(jax.jit, static_argnames=("alpha", "beta", "tau", "eps"))
def _relobralo_step_jit(losses_vec, step, init_losses, prev_losses, lmbda_ema,
                        key, *, alpha, beta, tau, eps):
    n = losses_vec.shape[-1]
    assert n <= _LANES, "num_losses must fit in one lane row (<=128)"

    step_arr = jnp.reshape(step.astype(jnp.int32), (1,))
    # Random-lookback Bernoulli(beta) draw done here (not in-kernel).
    rho = jax.random.bernoulli(key, beta).astype(jnp.float32).reshape(1)

    slab = jnp.zeros((_SUBLANES, _LANES), jnp.float32)
    slab = slab.at[0, :n].set(losses_vec.astype(jnp.float32))
    slab = slab.at[1, :n].set(init_losses.astype(jnp.float32))
    slab = slab.at[2, :n].set(prev_losses.astype(jnp.float32))
    slab = slab.at[3, :n].set(lmbda_ema.astype(jnp.float32))

    kernel = functools.partial(
        _relobralo_kernel,
        alpha=float(alpha), tau=float(tau), eps=float(eps), num_losses=n)

    out = pl.pallas_call(
        kernel,
        out_shape=jax.ShapeDtypeStruct((_SUBLANES, _LANES), jnp.float32),
        in_specs=[
            pl.BlockSpec(memory_space=pltpu.MemorySpace.SMEM),   # step
            pl.BlockSpec(memory_space=pltpu.MemorySpace.SMEM),   # rho
            pl.BlockSpec(memory_space=pltpu.MemorySpace.VMEM),   # fused slab
        ],
        out_specs=pl.BlockSpec(memory_space=pltpu.MemorySpace.VMEM),
        input_output_aliases={2: 0},   # update the state slab in place
    )(step_arr, rho, slab)

    loss = out[0, 0]
    new_init = out[1, :n]
    new_prev = out[2, :n]
    new_ema = out[3, :n]
    return loss, new_ema, new_init, new_prev


def relobralo_forward(losses_vec, step, state, key,
                      *, alpha=0.95, beta=0.99, tau=1.0, eps=1e-8,
                      weights=None):
    """One Relobralo.forward call.

    losses_vec : (num_losses,) f32 -- stacked values of the loss dict
    step       : int / int32 scalar (optimizer step)
    state      : (init_losses, prev_losses, lmbda_ema), each (num_losses,)
    key        : jax PRNG key for the Bernoulli(beta) lookback draw
    Returns (loss, lmbda_ema, new_state).
    """
    if weights is not None:
        # glue for weigh_losses: static per-loss weighting
        losses_vec = losses_vec * jnp.asarray(weights, jnp.float32)
    init_l, prev_l, ema = state
    loss, new_ema, new_init, new_prev = _relobralo_step_jit(
        losses_vec, jnp.asarray(step, jnp.int32), init_l, prev_l, ema, key,
        alpha=alpha, beta=beta, tau=tau, eps=eps)
    return loss, new_ema, (new_init, new_prev, new_ema)


def _relobralo_reference(losses, step, state, rho,
                         *, alpha=0.95, tau=1.0, eps=1e-8):
    """Pure-JAX mirror of the PyTorch module (for testing)."""
    init_l, prev_l, ema = state
    n = losses.shape[-1]
    if step == 0:
        return jnp.sum(losses), ema, (losses, losses, ema)
    norm_prev = jnp.max(losses / (tau * prev_l))
    norm_init = jnp.max(losses / (tau * init_l))
    lmb_prev = jnp.exp(losses / (tau * prev_l + eps) - norm_prev)
    lmb_init = jnp.exp(losses / (tau * init_l + eps) - norm_init)
    lmb_prev = lmb_prev * (n / (jnp.sum(lmb_prev) + eps))
    lmb_init = lmb_init * (n / (jnp.sum(lmb_init) + eps))
    new_ema = alpha * (rho * ema + (1.0 - rho) * lmb_init) \
        + (1.0 - alpha) * lmb_prev
    loss = jnp.sum(new_ema * losses)
    return loss, new_ema, (init_l, losses, new_ema)


if __name__ == "__main__":
    num_losses = 4
    key = jax.random.PRNGKey(0)
    k0, k1, kb0, kb1 = jax.random.split(key, 4)

    # deterministic synthetic "loss dict" values for two optimizer steps
    losses_step0 = jnp.abs(jax.random.normal(k0, (num_losses,), jnp.float32)) + 0.1
    losses_step1 = jnp.abs(jax.random.normal(k1, (num_losses,), jnp.float32)) + 0.1

    # module buffers: init_losses = prev_losses = zeros, lmbda_ema = ones
    state = (jnp.zeros((num_losses,), jnp.float32),
             jnp.zeros((num_losses,), jnp.float32),
             jnp.ones((num_losses,), jnp.float32))

    # ---- step 0: plain sum, buffers initialized ----
    loss0, ema0, state = relobralo_forward(losses_step0, 0, state, kb0)
    loss0 = jax.block_until_ready(loss0)
    assert jnp.allclose(loss0, jnp.sum(losses_step0), rtol=1e-6), "step-0 mismatch"
    assert jnp.allclose(state[0], losses_step0) and jnp.allclose(state[1], losses_step0)

    # ---- step 1: ReLoBRaLo weighting with random-lookback Bernoulli draw ----
    ref_state = (losses_step0, losses_step0, jnp.ones((num_losses,), jnp.float32))
    rho_ref = jax.random.bernoulli(kb1, 0.99).astype(jnp.float32)
    loss_ref, ema_ref, _ = _relobralo_reference(losses_step1, 1, ref_state, rho_ref)

    loss1, ema1, state = relobralo_forward(losses_step1, 1, state, kb1)
    loss1 = jax.block_until_ready(loss1)
    ema1 = jax.block_until_ready(ema1)

    assert bool(jnp.isfinite(loss1)) and bool(jnp.all(jnp.isfinite(ema1)))
    assert jnp.allclose(loss1, loss_ref, rtol=1e-4, atol=1e-5), \
        f"step-1 loss mismatch: {loss1} vs {loss_ref}"
    assert jnp.allclose(ema1, ema_ref, rtol=1e-4, atol=1e-5), "step-1 ema mismatch"

    print("KERNEL_OK")
</pallas_src>

<mosaic_0001>
module attributes {stable_mosaic.version = 11 : i64} {
  func.func @_relobralo_kernel(%arg0: memref<1xi32, #tpu.memory_space<smem>>, %arg1: memref<1xf32, #tpu.memory_space<smem>>, %arg2: memref<8x128xf32, #tpu.memory_space<vmem>>, %arg3: memref<8x128xf32, #tpu.memory_space<vmem>>) attributes {dimension_semantics = [], scalar_prefetch = 0 : i64, scratch_operands = 0 : i64, tpu.core_type = #tpu.core_type<tc>} {
    %c0 = arith.constant 0 : index
    %0 = memref.load %arg0[%c0] : memref<1xi32, #tpu.memory_space<smem>>
    %c0_0 = arith.constant 0 : index
    %1 = memref.load %arg1[%c0_0] : memref<1xf32, #tpu.memory_space<smem>>
    %c0_1 = arith.constant 0 : index
    %c0_2 = arith.constant 0 : index
    %2 = vector.load %arg2[%c0_1, %c0_2] : memref<8x128xf32, #tpu.memory_space<vmem>>, vector<8x128xf32>
    %3 = vector.extract_strided_slice %2 {offsets = [0, 0], sizes = [1, 128], strides = [1, 1]} : vector<8x128xf32> to vector<1x128xf32>
    %4 = vector.extract_strided_slice %2 {offsets = [1, 0], sizes = [1, 128], strides = [1, 1]} : vector<8x128xf32> to vector<1x128xf32>
    %5 = vector.extract_strided_slice %2 {offsets = [2, 0], sizes = [1, 128], strides = [1, 1]} : vector<8x128xf32> to vector<1x128xf32>
    %6 = vector.extract_strided_slice %2 {offsets = [3, 0], sizes = [1, 128], strides = [1, 1]} : vector<8x128xf32> to vector<1x128xf32>
    %7 = tpu.iota {dimensions = array<i32: 1>} : vector<1x128xi32>
    %c4_i32 = arith.constant 4 : i32
    %8 = vector.broadcast %c4_i32 : i32 to vector<1x128xi32>
    %9 = arith.cmpi slt, %7, %8 : vector<1x128xi32>
    %cst = arith.constant 0.000000e+00 : f32
    %10 = vector.broadcast %cst : f32 to vector<4x128xf32>
    %c0_i32 = arith.constant 0 : i32
    %11 = arith.cmpi eq, %0, %c0_i32 : i32
    %12 = arith.extui %11 : i1 to i32
    %c0_i32_3 = arith.constant 0 : i32
    %13 = arith.cmpi ne, %12, %c0_i32_3 : i32
    scf.if %13 {
      %cst_7 = arith.constant 0.000000e+00 : f32
      %17 = vector.broadcast %cst_7 : f32 to vector<1x128xf32>
      %18 = arith.select %9, %3, %17 : vector<1x128xi1>, vector<1x128xf32>
      %cst_8 = arith.constant dense<0.000000e+00> : vector<1xf32>
      %19 = vector.multi_reduction <add>, %18, %cst_8 [1] : vector<1x128xf32> to vector<1xf32>
      %20 = vector.shape_cast %19 : vector<1xf32> to vector<1x1xf32>
      %21 = vector.shape_cast %20 : vector<1x1xf32> to vector<1x1xf32>
      %22 = vector.broadcast %21 : vector<1x1xf32> to vector<1x128xf32>
      %23 = tpu.concatenate %22, %3, %3, %6, %10 in 0 : vector<1x128xf32>, vector<1x128xf32>, vector<1x128xf32>, vector<1x128xf32>, vector<4x128xf32> -> vector<8x128xf32>
      %c0_9 = arith.constant 0 : index
      %c0_10 = arith.constant 0 : index
      %24 = vector.load %arg3[%c0_9, %c0_10] : memref<8x128xf32, #tpu.memory_space<vmem>>, vector<8x128xf32>
      tpu.vector_store %arg3[%c0_9, %c0_10], %23 {strides = array<i32>} : memref<8x128xf32, #tpu.memory_space<vmem>>, vector<8x128xf32>,
    } else {
    }
    %c0_i32_4 = arith.constant 0 : i32
    %14 = arith.cmpi ne, %0, %c0_i32_4 : i32
    %15 = arith.extui %14 : i1 to i32
    %cst_5 = arith.constant 4.000000e+00 : f32
    %c0_i32_6 = arith.constant 0 : i32
    %16 = arith.cmpi ne, %15, %c0_i32_6 : i32
    scf.if %16 {
      %cst_7 = arith.constant 1.000000e+00 : f32
      %17 = vector.broadcast %cst_7 : f32 to vector<1x128xf32>
      %18 = arith.mulf %17, %5 : vector<1x128xf32>
      %cst_8 = arith.constant 9.99999993E-9 : f32
      %19 = vector.broadcast %cst_8 : f32 to vector<1x128xf32>
      %20 = arith.addf %18, %19 : vector<1x128xf32>
      %21 = arith.divf %3, %20 : vector<1x128xf32>
      %cst_9 = arith.constant 1.000000e+00 : f32
      %22 = vector.broadcast %cst_9 : f32 to vector<1x128xf32>
      %23 = arith.mulf %22, %4 : vector<1x128xf32>
      %cst_10 = arith.constant 9.99999993E-9 : f32
      %24 = vector.broadcast %cst_10 : f32 to vector<1x128xf32>
      %25 = arith.addf %23, %24 : vector<1x128xf32>
      %26 = arith.divf %3, %25 : vector<1x128xf32>
      %cst_11 = arith.constant 0xFF800000 : f32
      %27 = vector.broadcast %cst_11 : f32 to vector<1x128xf32>
      %28 = arith.select %9, %21, %27 : vector<1x128xi1>, vector<1x128xf32>
      %cst_12 = arith.constant dense<0xFF800000> : vector<1xf32>
      %29 = vector.multi_reduction <maximumf>, %28, %cst_12 [1] : vector<1x128xf32> to vector<1xf32>
      %30 = vector.shape_cast %29 : vector<1xf32> to vector<1x1xf32>
      %cst_13 = arith.constant 0xFF800000 : f32
      %31 = vector.broadcast %cst_13 : f32 to vector<1x128xf32>
      %32 = arith.select %9, %26, %31 : vector<1x128xi1>, vector<1x128xf32>
      %cst_14 = arith.constant dense<0xFF800000> : vector<1xf32>
      %33 = vector.multi_reduction <maximumf>, %32, %cst_14 [1] : vector<1x128xf32> to vector<1xf32>
      %34 = vector.shape_cast %33 : vector<1xf32> to vector<1x1xf32>
      %35 = vector.broadcast %30 : vector<1x1xf32> to vector<1x128xf32>
      %36 = arith.subf %21, %35 : vector<1x128xf32>
      %37 = math.exp %36 : vector<1x128xf32>
      %cst_15 = arith.constant 0.000000e+00 : f32
      %38 = vector.broadcast %cst_15 : f32 to vector<1x128xf32>
      %39 = arith.select %9, %37, %38 : vector<1x128xi1>, vector<1x128xf32>
      %40 = vector.broadcast %34 : vector<1x1xf32> to vector<1x128xf32>
      %41 = arith.subf %26, %40 : vector<1x128xf32>
      %42 = math.exp %41 : vector<1x128xf32>
      %cst_16 = arith.constant 0.000000e+00 : f32
      %43 = vector.broadcast %cst_16 : f32 to vector<1x128xf32>
      %44 = arith.select %9, %42, %43 : vector<1x128xi1>, vector<1x128xf32>
      %cst_17 = arith.constant dense<0.000000e+00> : vector<1xf32>
      %45 = vector.multi_reduction <add>, %39, %cst_17 [1] : vector<1x128xf32> to vector<1xf32>
      %46 = vector.shape_cast %45 : vector<1xf32> to vector<1x1xf32>
      %cst_18 = arith.constant 9.99999993E-9 : f32
      %47 = vector.broadcast %cst_18 : f32 to vector<1x1xf32>
      %48 = arith.addf %46, %47 : vector<1x1xf32>
      %49 = vector.broadcast %cst_5 : f32 to vector<1x1xf32>
      %50 = arith.divf %49, %48 : vector<1x1xf32>
      %51 = vector.broadcast %50 : vector<1x1xf32> to vector<1x128xf32>
      %52 = arith.mulf %39, %51 : vector<1x128xf32>
      %cst_19 = arith.constant dense<0.000000e+00> : vector<1xf32>
      %53 = vector.multi_reduction <add>, %44, %cst_19 [1] : vector<1x128xf32> to vector<1xf32>
      %54 = vector.shape_cast %53 : vector<1xf32> to vector<1x1xf32>
      %cst_20 = arith.constant 9.99999993E-9 : f32
      %55 = vector.broadcast %cst_20 : f32 to vector<1x1xf32>
      %56 = arith.addf %54, %55 : vector<1x1xf32>
      %57 = vector.broadcast %cst_5 : f32 to vector<1x1xf32>
      %58 = arith.divf %57, %56 : vector<1x1xf32>
      %59 = vector.broadcast %58 : vector<1x1xf32> to vector<1x128xf32>
      %60 = arith.mulf %44, %59 : vector<1x128xf32>
      %61 = vector.broadcast %1 : f32 to vector<1x128xf32>
      %62 = arith.mulf %61, %6 : vector<1x128xf32>
      %cst_21 = arith.constant 1.000000e+00 : f32
      %63 = arith.subf %cst_21, %1 : f32
      %64 = vector.broadcast %63 : f32 to vector<1x128xf32>
      %65 = arith.mulf %64, %60 : vector<1x128xf32>
      %66 = arith.addf %62, %65 : vector<1x128xf32>
      %cst_22 = arith.constant 0.949999988 : f32
      %67 = vector.broadcast %cst_22 : f32 to vector<1x128xf32>
      %68 = arith.mulf %67, %66 : vector<1x128xf32>
      %cst_23 = arith.constant 5.000000e-02 : f32
      %69 = vector.broadcast %cst_23 : f32 to vector<1x128xf32>
      %70 = arith.mulf %69, %52 : vector<1x128xf32>
      %71 = arith.addf %68, %70 : vector<1x128xf32>
      %72 = arith.mulf %71, %3 : vector<1x128xf32>
      %cst_24 = arith.constant 0.000000e+00 : f32
      %73 = vector.broadcast %cst_24 : f32 to vector<1x128xf32>
      %74 = arith.select %9, %72, %73 : vector<1x128xi1>, vector<1x128xf32>
      %cst_25 = arith.constant dense<0.000000e+00> : vector<1xf32>
      %75 = vector.multi_reduction <add>, %74, %cst_25 [1] : vector<1x128xf32> to vector<1xf32>
      %76 = vector.shape_cast %75 : vector<1xf32> to vector<1x1xf32>
      %77 = vector.shape_cast %76 : vector<1x1xf32> to vector<1x1xf32>
      %78 = vector.broadcast %77 : vector<1x1xf32> to vector<1x128xf32>
      %79 = tpu.concatenate %78, %4, %3, %71, %10 in 0 : vector<1x128xf32>, vector<1x128xf32>, vector<1x128xf32>, vector<1x128xf32>, vector<4x128xf32> -> vector<8x128xf32>
      %c0_26 = arith.constant 0 : index
      %c0_27 = arith.constant 0 : index
      %80 = vector.load %arg3[%c0_26, %c0_27] : memref<8x128xf32, #tpu.memory_space<vmem>>, vector<8x128xf32>
      tpu.vector_store %arg3[%c0_26, %c0_27], %79 {strides = array<i32>} : memref<8x128xf32, #tpu.memory_space<vmem>>, vector<8x128xf32>,
    } else {
    }
    return
  }
}

</mosaic_0001>

<bundles_post_ra>
// kernel: _relobralo_step_jit.1
= control target key start
LH: loop header
LB: loop body
LE: loop exit
PB: predicated region body
PF: predicated region fallthrough
CT: control target
= control target key end

     0   :  { %v19_v0 = vlaneseq  ;;  %s270_s0 = inlined_call_operand.<no memory space> [shape: s32[1], index: 0, kind: input, shape index: {}]   ;;  %s271_s1 = inlined_call_operand.<no memory space> [shape: f32[1], index: 1, kind: input, shape index: {}]   ;;  %s272_s2 = inlined_call_operand.vmem [shape: f32[8,128], index: 2, kind: input, shape index: {}, may-alias: {2,3}]   ;;  %s273_s3 = inlined_call_operand.vmem [shape: f32[8,128], index: 3, kind: output, shape index: {}, may-alias: {2,3}]  }
   0x1   :  { %v219_v1 = vld [vmem:[%s272_s2] sm:$0xff]  ;;  %p182_p0 = scmp.ne.s32.totalorder %s270_s0, 0 }
   0x2   :  { %v221_v2 = vand.u32 127, %v19_v0 }
   0x3   :  { %25 = sbr.rel (%p182_p0) target bundleno = 131 (0x83), region = 17 }
   0x4   :  { %vm21_vm0 = vcmp.lt.s32.totalorder %v221_v2, 4 }
   0x8   :  { %v26_v3 = vsel %vm21_vm0, %v219_v1, 0.0  ;;  %vm27_vm1 = vcmask 1040384   ;;  %v32_v5 = vrot.slane %v219_v1, 7  ;;  %v34_v6 = vrot.slane %v219_v1, 6 }
   0x9   :  { %v28_v4 = vsel %vm27_vm1, %v26_v3, 0.0  ;;  %vm37_vm2 = vcmask 1041408   ;;  %vm39_vm3 = vcmask 1042432   ;;  %vm41_vm4 = vcmask 1043456  }
   0xa   :  { %29 = vadd.xlane.f32.xlu0 %v28_v4 }
  0x7d   :  { %v30_v7 = vpop.xlane.xlu0 %29 }
  0x7e   :  { %v36_v8 = vsel %vm27_vm1, %v30_v7, %v32_v5 }
  0x7f   :  { %v38_v9 = vsel %vm37_vm2, %v36_v8, %v34_v6 }
  0x80   :  { %v40_v10 = vsel %vm39_vm3, %v38_v9, %v219_v1 }
  0x81   :  { %v42_v11 = vsel %vm41_vm4, %v40_v10, 0.0 }
  0x82   :  { %43 = vst [vmem:[%s273_s3] sm:$0xff] %v42_v11 }
  0x83 PF:  { %p183_p1 = scmp.eq.s32.totalorder %s270_s0, 0 }
  0x84   :  { %s143_s20 = ssub.f32 (!%p183_p1), 1.0, %s271_s1 }
  0x85   :  { %47 = sbr.rel (%p183_p1) target bundleno = 572 (0x23c), region = 21 }
  0x8a   :  { %v48_v12 = vadd.f32 1e-08, %v219_v1  ;;  %vm85_vm13 = vcmask 1040384   ;;  %v144_v10 = vstv %s143_s20 }
  0x8c   :  { %v67_v13 = vrot.slane %v48_v12, 1  ;;  %v50_v14 = vrot.slane %v48_v12, 2 }
  0x8e   :  { %184 = vrcp.f32 %v67_v13  ;;  %vm74_vm5 = vweird.f32 %v67_v13  ;;  %v80_v18 = vand.u32 2147483648, %v67_v13  ;;  %v78_v21 = vand.u32 2147483647, %v67_v13 }
  0x8f   :  { %186 = vrcp.f32 %v50_v14  ;;  %v63_v22 = vand.u32 2147483648, %v50_v14  ;;  %vm57_vm7 = vweird.f32 %v50_v14  ;;  %v61_v24 = vand.u32 2147483647, %v50_v14 }
  0x90   :  { %v81_v26 = vor.u32 1.1754944e-38, %v80_v18  ;;  %vm79_vm10 = vcmp.eq.f32.partialorder %v78_v21, 8.507059e+37 }
  0x91   :  { %v64_v29 = vor.u32 1.1754944e-38, %v63_v22  ;;  %vm62_vm12 = vcmp.eq.f32.partialorder %v61_v24, 8.507059e+37 }
  0x94   :  { %v185_v15 = vpop.eup %184 }
  0x95   :  { %v187_v16 = vpop.eup %186  ;;  %v70_v17 = vmul.f32 %v185_v15, %v67_v13  ;;  %vm75_vm6 = vweird.f32 %v185_v15 }
  0x96   :  { %v53_v19 = vmul.f32 %v187_v16, %v50_v14  ;;  %vm58_vm8 = vweird.f32 %v187_v16  ;;  %vm76_vm9 = vmor %vm74_vm5, %vm75_vm6  ;;  %v141_v14 = vstv %s271_s1 }
  0x97   :  { %v71_v20 = vsub.f32 1.0, %v70_v17  ;;  %vm59_vm11 = vmor %vm57_vm7, %vm58_vm8  ;;  %vm161_vm7 = vcmask 1043459   ;;  %vm171_vm8 = vcmask 1041408  }
  0x98   :  { %v54_v23 = vsub.f32 1.0, %v53_v19  ;;  %v142_v19 = vmul.f32 %v141_v14, %v219_v1 }
  0x99   :  { %v72_v25 = vmul.f32 %v185_v15, %v71_v20 }
  0x9a   :  { %v55_v27 = vmul.f32 %v187_v16, %v54_v23 }
  0x9b   :  { %v73_v28 = vadd.f32 %v185_v15, %v72_v25 }
  0x9c   :  { %v56_v30 = vadd.f32 %v187_v16, %v55_v27 }
  0x9d   :  { %v77_v31 = vsel %vm76_vm9, %v185_v15, %v73_v28  ;;  %v157_v28 = vrot.slane %v219_v1, 5  ;;  %vm173_vm9 = vcmask 1042432  }
  0x9e   :  { %v82_v32 = vsel %vm79_vm10, %v81_v26, %v77_v31  ;;  %v60_v33 = vsel %vm59_vm11, %v187_v16, %v56_v30  ;;  %vm175_vm10 = vcmask 1043456  }
  0x9f   :  { %v83_v34 = vmul.f32 %v82_v32, %v219_v1  ;;  %v65_v35 = vsel %vm62_vm12, %v64_v29, %v60_v33  ;;  %v168_v33 = vrot.slane %v219_v1, 6 }
  0xa0   :  { %v66_v37 = vmul.f32 %v65_v35, %v219_v1 }
  0xa1   :  { %v89_v36 = vsel %vm21_vm0, %v83_v34, -inf }
  0xa2   :  { %v90_v38 = vsel %vm85_vm13, %v89_v36, -inf  ;;  %v84_v39 = vsel %vm21_vm0, %v66_v37, -inf }
  0xa3   :  { %91 = vmax.xlane.f32.xlu0 %v90_v38  ;;  %v86_v40 = vsel %vm85_vm13, %v84_v39, -inf }
  0xab   :  { %87 = vmax.xlane.f32.xlu0 %v86_v40 }
 0x116   :  { %v92_v41 = vpop.xlane.xlu0 %91 }
 0x117   :  { %v97_v42 = vsub.f32 %v83_v34, %v92_v41 }
 0x119   :  { %v98_v43 = vmul.f32 1.442695, %v97_v42 }
 0x11b   :  { %188 = vpow2.f32 %v98_v43 }
 0x11e   :  { %v88_v44 = vpop.xlane.xlu0 %87 }
 0x11f   :  { %v93_v45 = vsub.f32 %v66_v37, %v88_v44 }
 0x121   :  { %v189_v46 = vpop.eup %188  ;;  %v94_v47 = vmul.f32 1.442695, %v93_v45 }
 0x122   :  { %v100_v48 = vsel %vm21_vm0, %v189_v46, 0.0 }
 0x123   :  { %190 = vpow2.f32 %v94_v47  ;;  %v121_v49 = vsel %vm85_vm13, %v100_v48, 0.0 }
 0x124   :  { %122 = vadd.xlane.f32.xlu1 %v121_v49 }
 0x129   :  { %v191_v50 = vpop.eup %190 }
 0x12a   :  { %v96_v51 = vsel %vm21_vm0, %v191_v50, 0.0 }
 0x12b   :  { %v101_v52 = vsel %vm85_vm13, %v96_v51, 0.0 }
 0x12c   :  { %102 = vadd.xlane.f32.xlu1 %v101_v52 }
 0x197   :  { %v123_v53 = vpop.xlane.xlu1 %122 }
 0x198   :  { %v124_v54 = vadd.f32 1e-08, %v123_v53 }
 0x19a   :  { %192 = vrcp.f32 %v124_v54  ;;  %v136_v60 = vand.u32 2147483648, %v124_v54  ;;  %v134_v62 = vand.u32 2147483647, %v124_v54  ;;  %vm130_vm15 = vweird.f32 %v124_v54 }
 0x19c   :  { %v137_v3 = vor.u32 1.1754944e-38, %v136_v60  ;;  %vm135_vm2 = vcmp.eq.f32.partialorder %v134_v62, 8.507059e+37 }
 0x19f   :  { %v103_v55 = vpop.xlane.xlu1 %102 }
 0x1a0   :  { %v193_v56 = vpop.eup %192  ;;  %v104_v57 = vadd.f32 1e-08, %v103_v55 }
 0x1a1   :  { %v126_v58 = vmul.f32 %v193_v56, %v124_v54  ;;  %vm131_vm14 = vweird.f32 %v193_v56 }
 0x1a2   :  { %194 = vrcp.f32 %v104_v57  ;;  %vm132_vm1 = vmor %vm130_vm15, %vm131_vm14  ;;  %v116_v9 = vand.u32 2147483648, %v104_v57  ;;  %v114_v12 = vand.u32 2147483647, %v104_v57  ;;  %vm110_vm4 = vweird.f32 %v104_v57 }
 0x1a3   :  { %v127_v59 = vsub.f32 1.0, %v126_v58 }
 0x1a4   :  { %v117_v17 = vor.u32 1.1754944e-38, %v116_v9  ;;  %vm115_vm6 = vcmp.eq.f32.partialorder %v114_v12, 8.507059e+37 }
 0x1a5   :  { %v128_v61 = vmul.f32 %v193_v56, %v127_v59 }
 0x1a7   :  { %v129_v63 = vadd.f32 %v193_v56, %v128_v61 }
 0x1a8   :  { %v195_v0 = vpop.eup %194 }
 0x1a9   :  { %v106_v4 = vmul.f32 %v195_v0, %v104_v57  ;;  %v133_v5 = vsel %vm132_vm1, %v193_v56, %v129_v63  ;;  %vm111_vm3 = vweird.f32 %v195_v0 }
 0x1aa   :  { %v138_v6 = vsel %vm135_vm2, %v137_v3, %v133_v5  ;;  %vm112_vm5 = vmor %vm110_vm4, %vm111_vm3 }
 0x1ab   :  { %v107_v7 = vsub.f32 1.0, %v106_v4  ;;  %v139_v8 = vmul.f32 4.0, %v138_v6 }
 0x1ad   :  { %v108_v11 = vmul.f32 %v195_v0, %v107_v7  ;;  %v140_v13 = vmul.f32 %v139_v8, %v100_v48 }
 0x1af   :  { %v109_v15 = vadd.f32 %v195_v0, %v108_v11  ;;  %v145_v16 = vmul.f32 %v144_v10, %v140_v13 }
 0x1b1   :  { %v113_v18 = vsel %vm112_vm5, %v195_v0, %v109_v15  ;;  %v147_v20 = vrot.slane %v145_v16, 5 }
 0x1b2   :  { %v118_v21 = vsel %vm115_vm6, %v117_v17, %v113_v18 }
 0x1b3   :  { %v119_v22 = vmul.f32 4.0, %v118_v21  ;;  %v149_v24 = vadd.f32 %v147_v20, %v142_v19 }
 0x1b5   :  { %v120_v23 = vmul.f32 %v119_v22, %v96_v51  ;;  %v150_v26 = vmul.f32 0.95, %v149_v24 }
 0x1b7   :  { %v151_v25 = vmul.f32 0.05, %v120_v23 }
 0x1b9   :  { %v153_v27 = vrot.slane %v151_v25, 5 }
 0x1bb   :  { %v155_v29 = vadd.f32 %v153_v27, %v150_v26 }
 0x1bd   :  { %v159_v30 = vmul.f32 %v157_v28, %v155_v29 }
 0x1bf   :  { %v160_v31 = vsel %vm21_vm0, %v159_v30, 0.0 }
 0x1c0   :  { %v162_v32 = vsel %vm161_vm7, %v160_v31, 0.0 }
 0x1c1   :  { %163 = vadd.xlane.f32.xlu2 %v162_v32 }
 0x234   :  { %v164_v34 = vpop.xlane.xlu2 %163 }
 0x235   :  { %v166_v35 = vrot.slane %v164_v34, 3 }
 0x237   :  { %v170_v36 = vsel %vm85_vm13, %v166_v35, %v219_v1 }
 0x238   :  { %v172_v37 = vsel %vm171_vm8, %v170_v36, %v168_v33 }
 0x239   :  { %v174_v38 = vsel %vm173_vm9, %v172_v37, %v155_v29 }
 0x23a   :  { %v176_v39 = vsel %vm175_vm10, %v174_v38, 0.0 }
 0x23b   :  { %177 = vst [vmem:[%s273_s3] sm:$0xff] %v176_v39 }
 0x23c PF:  {}

</bundles_post_ra>
